<compile_context>
chip_gen: v7x
topology: tpu7x:2x2x1
jax: 0.10.0
libtpu: 0.0.40
codegen_flags: <defaults>
</compile_context>

<pallas_src>
import functools

import jax
import jax.numpy as jnp
from jax.experimental import pallas as pl
from jax.experimental.pallas import tpu as pltpu


def mha_kernel(x_ref, w3_ref, wproj_ref, bproj_ref, o_ref, *, n_heads, head_size):
    _, T, E = x_ref.shape
    H, hs = n_heads, head_size

    x = x_ref[0]                                   # (T, E) bf16 — one batch item/step

    # Head-batched QKV projection: (3H, T, E) @ (3H, E, hs) -> (3H, T, hs), f32 acc.
    # Batch dim is leading on both operands -> plain batched MXU matmul, no transposes.
    x_b = jnp.broadcast_to(x, (3 * H, T, E))
    qkv = jnp.einsum('gte,ged->gtd', x_b, w3_ref[...],
                     preferred_element_type=jnp.float32)      # (3H, T, hs) f32

    # Heads split on the leading (major) axis — free slices, no lane shuffles.
    q = qkv[0:H].astype(jnp.bfloat16)              # (H, T, hs); 1/sqrt(hs) folded in W_q
    k = qkv[H:2 * H].astype(jnp.bfloat16)
    v = qkv[2 * H:3 * H].astype(jnp.bfloat16)

    # Scores for all heads in one batched contraction, f32.
    s = jnp.einsum('htd,hsd->hts', q, k, preferred_element_type=jnp.float32)  # (H, T, T)

    # Softmax in f32 (casts only at MXU operand boundaries); reciprocal on the EUP.
    m = jnp.max(s, axis=-1, keepdims=True)
    p = jnp.exp(s - m)
    inv = pl.reciprocal(jnp.sum(p, axis=-1, keepdims=True), approx=True)
    p = (p * inv).astype(jnp.bfloat16)
    # NOTE: attention-weight dropout is identity in eval mode.

    heads = jnp.einsum('hts,hsd->htd', p, v, preferred_element_type=jnp.float32)  # (H, T, hs)

    # Output projection: contract per head against (H, hs, E_pad) and reduce over
    # heads — concat-of-heads @ W_proj without any concat / lane shuffling.
    proj = jnp.einsum('htd,hde->hte', heads.astype(jnp.bfloat16), wproj_ref[...],
                      preferred_element_type=jnp.float32)     # (H, T, E_pad) f32
    out = jnp.sum(proj, axis=0) + bproj_ref[...]              # (T, E_pad) + (1, E_pad)
    o_ref[0] = out                                            # lane-dense (E_pad=128k) store
    # NOTE: output dropout is identity in eval mode.
    # TODO(synk): for large T, switch to a flash-style (batch/head, q-tile) grid with
    # an inner KV loop + online softmax so the (H, T, T) score tensor never materializes.


def multi_head_attention(x, wq, wk, wv, wproj, bproj):
    """x: (B,T,E) f32; wq/wk/wv: (H,E,hs); wproj: (H*hs,E); bproj: (1,E). Returns (B,T,E) f32."""
    B, T, E = x.shape
    H, _, hs = wq.shape
    E_pad = ((E + 127) // 128) * 128               # lane-dense output width
    scale = hs ** -0.5

    # Head-batched QKV weights (3H, E, hs): [Q heads | K heads | V heads],
    # with the 1/sqrt(hs) score scale folded into the Q weights (free at runtime).
    w3 = jnp.concatenate([wq * scale, wk, wv], axis=0).astype(jnp.bfloat16)
    # Output projection per-head (H, hs, E), padded to 128 lanes; bias padded too.
    wproj_p = jnp.pad(wproj.reshape(H, hs, E),
                      ((0, 0), (0, 0), (0, E_pad - E))).astype(jnp.bfloat16)
    bproj_p = jnp.pad(bproj.reshape(1, E), ((0, 0), (0, E_pad - E))).astype(jnp.float32)
    x_bf16 = x.astype(jnp.bfloat16)

    kernel = functools.partial(mha_kernel, n_heads=H, head_size=hs)
    out_p = pl.pallas_call(
        kernel,
        out_shape=jax.ShapeDtypeStruct((B, T, E_pad), jnp.float32),
        grid_spec=pltpu.PrefetchScalarGridSpec(
            num_scalar_prefetch=0,
            grid=(B,),
            in_specs=[
                # Activations stream one batch item per grid step.
                pl.BlockSpec((1, T, E), lambda b: (b, 0, 0)),
                # Weights: constant index_map -> VMEM-resident, not re-DMA'd per step.
                pl.BlockSpec((3 * H, E, hs), lambda b: (0, 0, 0)),
                pl.BlockSpec((H, hs, E_pad), lambda b: (0, 0, 0)),
                pl.BlockSpec((1, E_pad), lambda b: (0, 0)),
            ],
            out_specs=pl.BlockSpec((1, T, E_pad), lambda b: (b, 0, 0)),
        ),
        compiler_params=pltpu.CompilerParams(
            # Batch axis is independent -> shards across the two TensorCores on v7x.
            dimension_semantics=("parallel",),
        ),
    )(x_bf16, w3, wproj_p, bproj_p)
    return out_p[..., :E]


def reference_mha(x, wq, wk, wv, wproj, bproj):
    """Pure-JAX f32 reference matching the PyTorch module (dropout = identity)."""
    outs = []
    for h in range(wq.shape[0]):
        Q = x @ wq[h]
        K = x @ wk[h]
        V = x @ wv[h]
        W = (Q @ jnp.swapaxes(K, -1, -2)) * (K.shape[-1] ** -0.5)
        W = jax.nn.softmax(W, axis=-1)
        outs.append(W @ V)
    cat = jnp.concatenate(outs, axis=-1)
    return cat @ wproj + bproj


if __name__ == "__main__":
    B, T, E = 2, 16, 32
    n_heads, head_size = 4, 8
    # dropout = 0.1 in the PyTorch module; identity at inference.

    key = jax.random.PRNGKey(0)
    kx, kq, kk, kv, kp, kb = jax.random.split(key, 6)
    std = 0.125
    x = jax.random.normal(kx, (B, T, E), jnp.float32)
    wq = std * jax.random.normal(kq, (n_heads, E, head_size), jnp.float32)
    wk = std * jax.random.normal(kk, (n_heads, E, head_size), jnp.float32)
    wv = std * jax.random.normal(kv, (n_heads, E, head_size), jnp.float32)
    wproj = std * jax.random.normal(kp, (n_heads * head_size, E), jnp.float32)
    bproj = (std * jax.random.normal(kb, (1, E))).astype(jnp.float32)

    out = multi_head_attention(x, wq, wk, wv, wproj, bproj)
    jax.block_until_ready(out)
    assert out.shape == (B, T, E) and out.dtype == jnp.float32

    ref = reference_mha(x, wq, wk, wv, wproj, bproj)
    max_err = float(jnp.max(jnp.abs(out - ref)))
    # bf16 matmul operands + approx reciprocal -> deliberately loose tolerance.
    assert max_err < 5e-2, f"max abs error {max_err}"
    print("KERNEL_OK")
</pallas_src>

<mosaic_0001>
module attributes {stable_mosaic.version = 11 : i64} {
  func.func @mha_kernel(%arg0: i32, %arg1: memref<1x16x32xbf16, #tpu.memory_space<vmem>>, %arg2: memref<12x32x8xbf16, #tpu.memory_space<vmem>>, %arg3: memref<4x8x128xbf16, #tpu.memory_space<vmem>>, %arg4: memref<1x128xf32, #tpu.memory_space<vmem>>, %arg5: memref<1x16x128xf32, #tpu.memory_space<vmem>>) attributes {dimension_semantics = [#tpu.dimension_semantics<parallel>], iteration_bounds = array<i64: 2>, scalar_prefetch = 0 : i64, scratch_operands = 0 : i64, tpu.core_type = #tpu.core_type<tc>, window_params = [{transform_indices = @transform_0, window_bounds = array<i64: 1, 16, 32>}, {pipeline_mode = #tpu.pipeline_mode<synchronous>, transform_indices = @transform_1, window_bounds = array<i64: 12, 32, 8>}, {pipeline_mode = #tpu.pipeline_mode<synchronous>, transform_indices = @transform_2, window_bounds = array<i64: 4, 8, 128>}, {pipeline_mode = #tpu.pipeline_mode<synchronous>, transform_indices = @transform_3, window_bounds = array<i64: 1, 128>}, {transform_indices = @transform_4, window_bounds = array<i64: 1, 16, 128>}]} {
    %c0 = arith.constant 0 : index
    %c0_0 = arith.constant 0 : index
    %c0_1 = arith.constant 0 : index
    %0 = vector.load %arg1[%c0, %c0_0, %c0_1] : memref<1x16x32xbf16, #tpu.memory_space<vmem>>, vector<1x16x32xbf16>
    %1 = vector.shape_cast %0 : vector<1x16x32xbf16> to vector<16x32xbf16>
    %2 = vector.shape_cast %1 : vector<16x32xbf16> to vector<1x16x32xbf16>
    %3 = vector.broadcast %2 : vector<1x16x32xbf16> to vector<12x16x32xbf16>
    %c0_2 = arith.constant 0 : index
    %c0_3 = arith.constant 0 : index
    %c0_4 = arith.constant 0 : index
    %4 = vector.load %arg2[%c0_2, %c0_3, %c0_4] : memref<12x32x8xbf16, #tpu.memory_space<vmem>>, vector<12x32x8xbf16>
    "tpu.trace_start"() <{level = 10 : i32, message = "gte,ged->gtd"}> : () -> ()
    %cst = arith.constant dense<0.000000e+00> : vector<12x16x8xf32>
    %5 = tpu.matmul %3, %4, %cst {dimension_numbers = #tpu.dot_dimension_numbers<[2], [1], [1], [2], [0, 0, 0, 1, 1, 2], [0], [0]>} : vector<12x16x32xbf16>, vector<12x32x8xbf16>, vector<12x16x8xf32> -> vector<12x16x8xf32>
    "tpu.trace_stop"() : () -> ()
    %6 = vector.extract_strided_slice %5 {offsets = [0, 0, 0], sizes = [4, 16, 8], strides = [1, 1, 1]} : vector<12x16x8xf32> to vector<4x16x8xf32>
    %7 = arith.truncf %6 : vector<4x16x8xf32> to vector<4x16x8xbf16>
    %8 = vector.extract_strided_slice %5 {offsets = [4, 0, 0], sizes = [4, 16, 8], strides = [1, 1, 1]} : vector<12x16x8xf32> to vector<4x16x8xf32>
    %9 = arith.truncf %8 : vector<4x16x8xf32> to vector<4x16x8xbf16>
    %10 = vector.extract_strided_slice %5 {offsets = [8, 0, 0], sizes = [4, 16, 8], strides = [1, 1, 1]} : vector<12x16x8xf32> to vector<4x16x8xf32>
    %11 = arith.truncf %10 : vector<4x16x8xf32> to vector<4x16x8xbf16>
    "tpu.trace_start"() <{level = 10 : i32, message = "htd,hsd->hts"}> : () -> ()
    %cst_5 = arith.constant dense<0.000000e+00> : vector<4x16x16xf32>
    %12 = tpu.matmul %7, %9, %cst_5 {dimension_numbers = #tpu.dot_dimension_numbers<[2], [2], [1], [1], [0, 0, 0, 1, 1, 1], [0], [0]>} : vector<4x16x8xbf16>, vector<4x16x8xbf16>, vector<4x16x16xf32> -> vector<4x16x16xf32>
    "tpu.trace_stop"() : () -> ()
    %cst_6 = arith.constant dense<0xFF800000> : vector<4x16xf32>
    %13 = vector.multi_reduction <maximumf>, %12, %cst_6 [2] : vector<4x16x16xf32> to vector<4x16xf32>
    %14 = vector.shape_cast %13 : vector<4x16xf32> to vector<4x16x1xf32>
    %15 = vector.broadcast %14 : vector<4x16x1xf32> to vector<4x16x16xf32>
    %16 = arith.subf %12, %15 : vector<4x16x16xf32>
    %17 = math.exp %16 : vector<4x16x16xf32>
    %cst_7 = arith.constant dense<0.000000e+00> : vector<4x16xf32>
    %18 = vector.multi_reduction <add>, %17, %cst_7 [2] : vector<4x16x16xf32> to vector<4x16xf32>
    %19 = vector.shape_cast %18 : vector<4x16xf32> to vector<4x16x1xf32>
    %20 = tpu.reciprocal %19 {approx = true} : vector<4x16x1xf32> -> vector<4x16x1xf32>
    %21 = vector.broadcast %20 : vector<4x16x1xf32> to vector<4x16x16xf32>
    %22 = arith.mulf %17, %21 : vector<4x16x16xf32>
    %23 = arith.truncf %22 : vector<4x16x16xf32> to vector<4x16x16xbf16>
    "tpu.trace_start"() <{level = 10 : i32, message = "hts,hsd->htd"}> : () -> ()
    %cst_8 = arith.constant dense<0.000000e+00> : vector<4x16x8xf32>
    %24 = tpu.matmul %23, %11, %cst_8 {dimension_numbers = #tpu.dot_dimension_numbers<[2], [1], [1], [2], [0, 0, 0, 1, 1, 2], [0], [0]>} : vector<4x16x16xbf16>, vector<4x16x8xbf16>, vector<4x16x8xf32> -> vector<4x16x8xf32>
    "tpu.trace_stop"() : () -> ()
    %25 = arith.truncf %24 : vector<4x16x8xf32> to vector<4x16x8xbf16>
    %c0_9 = arith.constant 0 : index
    %c0_10 = arith.constant 0 : index
    %c0_11 = arith.constant 0 : index
    %26 = vector.load %arg3[%c0_9, %c0_10, %c0_11] : memref<4x8x128xbf16, #tpu.memory_space<vmem>>, vector<4x8x128xbf16>
    "tpu.trace_start"() <{level = 10 : i32, message = "htd,hde->hte"}> : () -> ()
    %cst_12 = arith.constant dense<0.000000e+00> : vector<4x16x128xf32>
    %27 = tpu.matmul %25, %26, %cst_12 {dimension_numbers = #tpu.dot_dimension_numbers<[2], [1], [1], [2], [0, 0, 0, 1, 1, 2], [0], [0]>} : vector<4x16x8xbf16>, vector<4x8x128xbf16>, vector<4x16x128xf32> -> vector<4x16x128xf32>
    "tpu.trace_stop"() : () -> ()
    %cst_13 = arith.constant dense<0.000000e+00> : vector<16x128xf32>
    %28 = vector.multi_reduction <add>, %27, %cst_13 [0] : vector<4x16x128xf32> to vector<16x128xf32>
    %c0_14 = arith.constant 0 : index
    %c0_15 = arith.constant 0 : index
    %29 = vector.load %arg4[%c0_14, %c0_15] : memref<1x128xf32, #tpu.memory_space<vmem>>, vector<1x128xf32>
    %30 = vector.broadcast %29 : vector<1x128xf32> to vector<16x128xf32>
    %31 = arith.addf %28, %30 : vector<16x128xf32>
    %c0_16 = arith.constant 0 : index
    %c0_17 = arith.constant 0 : index
    %c0_18 = arith.constant 0 : index
    %32 = vector.load %arg5[%c0_16, %c0_17, %c0_18] : memref<1x16x128xf32, #tpu.memory_space<vmem>>, vector<1x16x128xf32>
    %33 = vector.shape_cast %32 : vector<1x16x128xf32> to vector<16x128xf32>
    %34 = vector.shape_cast %31 : vector<16x128xf32> to vector<1x16x128xf32>
    tpu.vector_store %arg5[%c0_16, %c0_17, %c0_18], %34 {strides = array<i32>} : memref<1x16x128xf32, #tpu.memory_space<vmem>>, vector<1x16x128xf32>,
    return
  }
  func.func @transform_0(%arg0: i32) -> (i32, i32, i32) {
    %c0_i32 = arith.constant 0 : i32
    %c0_i32_0 = arith.constant 0 : i32
    %c0_i32_1 = arith.constant 0 : i32
    return %arg0, %c0_i32, %c0_i32_0 : i32, i32, i32
  }
  func.func @transform_1(%arg0: i32) -> (i32, i32, i32) {
    %c0_i32 = arith.constant 0 : i32
    %c0_i32_0 = arith.constant 0 : i32
    %c0_i32_1 = arith.constant 0 : i32
    %c0_i32_2 = arith.constant 0 : i32
    return %c0_i32, %c0_i32_0, %c0_i32_1 : i32, i32, i32
  }
  func.func @transform_2(%arg0: i32) -> (i32, i32, i32) {
    %c0_i32 = arith.constant 0 : i32
    %c0_i32_0 = arith.constant 0 : i32
    %c0_i32_1 = arith.constant 0 : i32
    %c0_i32_2 = arith.constant 0 : i32
    return %c0_i32, %c0_i32_0, %c0_i32_1 : i32, i32, i32
  }
  func.func @transform_3(%arg0: i32) -> (i32, i32) {
    %c0_i32 = arith.constant 0 : i32
    %c0_i32_0 = arith.constant 0 : i32
    %c0_i32_1 = arith.constant 0 : i32
    return %c0_i32, %c0_i32_0 : i32, i32
  }
  func.func @transform_4(%arg0: i32) -> (i32, i32, i32) {
    %c0_i32 = arith.constant 0 : i32
    %c0_i32_0 = arith.constant 0 : i32
    %c0_i32_1 = arith.constant 0 : i32
    return %arg0, %c0_i32, %c0_i32_0 : i32, i32, i32
  }
}

</mosaic_0001>

<bundles_post_ra>
// kernel: tpu_custom_call.1
= control target key start
LH: loop header
LB: loop body
LE: loop exit
PB: predicated region body
PF: predicated region fallthrough
CT: control target
= control target key end

     0   :  { %9 = vsyncpa [#allocation3], 0  ;;  %s2492_s0 = inlined_call_operand.vmem [shape: bf16[2,16,32], index: 0, kind: input, shape index: {}]   ;;  %s2493_s1 = inlined_call_operand.vmem [shape: bf16[12,32,8], index: 1, kind: input, shape index: {}]   ;;  %s2494_s2 = inlined_call_operand.vmem [shape: bf16[4,8,128], index: 2, kind: input, shape index: {}]   ;;  %s2495_s3 = inlined_call_operand.vmem [shape: f32[1,128], index: 3, kind: input, shape index: {}]   ;;  %s2496_s4 = inlined_call_operand.hbm [shape: f32[2,16,128], index: 4, kind: output, shape index: {}]  }
   0x1   :  { %11 = vsyncpa [#allocation3 + $0x1], 0  ;;  %s2138_s15 = smov 0   ;;  %s2140_s16 = smov 0  }
   0x2   :  { %s2142_s17 = smov 0   ;;  %s2144_s18 = smov 0  }
   0x3 LB: > { %s2159_s19 = sadd.s32 4294967295, %s2106_s18   ;;  %s1652_s20 = sadd.s32 4294967294, %s2106_s18   ;;  %s2106_s18 = sphi %s2144_s18, %s2502_s18   ;;  %s2102_s17 = sphi %s2142_s17, %s2501_s17   ;;  %s2098_s16 = sphi %s2140_s16, %s2500_s16   ;;  %s2094_s15 = sphi %s2138_s15, %s2499_s15  }
   0x4   : > { %s2163_s21 = sadd.s32 1, %s2106_s18   ;;  %s113_s22 = sadd.s32 1, %s2102_s17 }
   0x5   : > { %s110_s23 = ssub.s32 %s2106_s18, %s2163_s21  ;;  %p123_p0 = scmp.ne.s32.totalorder %s2102_s17, %s2098_s16 }
   0x6   : > { %p111_p1 = scmp.eq.s32.totalorder %s110_s23, 0  ;;  %p124_p2 = scmp.eq.s32.totalorder %s2159_s19, 1 }
   0x7   : > { %p129_p3 = scmp.ne.s32.totalorder %s2098_s16, %s2094_s15  ;;  %p130_p4 = scmp.eq.s32.totalorder %s1652_s20, 1 }
   0x8   : > { %s2174_s24 = scalar_select %p111_p1, %s2102_s17, %s113_s22  }
   0x9   : > { %p2176_p5 = por %p124_p2, %p123_p0  ;;  %p2180_p6 = por %p130_p4, %p129_p3 }
   0xa   : > { %p1655_p7 = scmp.ge.s32.totalorder %s2106_s18, 1  ;;  %p165_p8 = scmp.lt.s32.totalorder %s2106_s18, 3 }
   0xc   : > { %p166_p9 = pnand %p1655_p7, %p165_p8 }
   0xd   : > { %v1987_v0 = vld [vmem:[%s2493_s1] sm:$0xff] (!%p166_p9)   ;;  %v2108_v1 = vmov (!%p166_p9), 0.0   ;;  %v1988_v2 = vld [vmem:[%s2493_s1 + $0x10] sm:$0xff] (!%p166_p9)   ;;  %v1989_v3 = vld [vmem:[%s2493_s1 + $0x8] sm:$0xff] (!%p166_p9)   ;;  %vm2109_vm0 = vmmov (!%p166_p9), 0   ;;  %p191_p10 = scmp.lt.s32.totalorder (!%p166_p9), %s2159_s19, 1 }
   0xe   : > { %169 = sbr.rel (%p166_p9) target bundleno = 1259 (0x4eb), region = 36  ;;  %1776 = vmatprep.subr.bf16.mxu0 (!%p166_p9), %v2108_v1  ;;  %1784 = vmatprep.subr.bf16.mxu1 (!%p166_p9), %v2108_v1  ;;  %v1990_v4 = vld [vmem:[%s2493_s1 + $0x18] sm:$0xff] (!%p166_p9)   ;;  %v1992_v5 = vld [vmem:[%s2493_s1 + $0x20] sm:$0xff] (!%p166_p9)   ;;  %vm264_vm1 = vcmask (!%p166_p9), 261120   ;;  %v1993_v6 = vld [vmem:[%s2493_s1 + $0x30] sm:$0xff] (!%p166_p9)   ;;  %vm904_vm2 = vcmask (!%p166_p9), 64512  }
   0xf   : > { %1777 = vmatpush3.bf16.msra.mxu0 (!%p166_p9), %v1987_v0  ;;  %1780 = vmatprep.mubr.msk.bf16.mxu0 (!%p166_p9), %vm2109_vm0, %v2108_v1  ;;  %v1994_v8 = vld [vmem:[%s2493_s1 + $0x28] sm:$0xff] (!%p166_p9)   ;;  %v1995_v9 = vld [vmem:[%s2493_s1 + $0x38] sm:$0xff] (!%p166_p9)   ;;  %v1996_v10 = vld [vmem:[%s2493_s1 + $0x40] sm:$0xff] (!%p166_p9)   ;;  %vm1093_vm3 = vcmask (!%p166_p9), 130048   ;;  %vm1373_vm4 = vcmask (!%p166_p9), 1043456   ;;  %s188_s11 = sand.u32 (!%p166_p9), 1, %s2098_s16  }
  0x10   : > { %1785 = vmatpush3.bf16.msra.mxu1 (!%p166_p9), %v1988_v2  ;;  %1778 = vmatprep.subr.bf16.mxu0 (!%p166_p9), %v2108_v1  ;;  %v1997_v11 = vld [vmem:[%s2493_s1 + $0x50] sm:$0xff] (!%p166_p9)   ;;  %v1998_v12 = vld [vmem:[%s2493_s1 + $0x48] sm:$0xff] (!%p166_p9)   ;;  %v1999_v13 = vld [vmem:[%s2493_s1 + $0x58] sm:$0xff] (!%p166_p9)   ;;  %s1656_s12 = sshll.u32 (!%p166_p9), %s188_s11, 4  ;;  %s1715_s23 = sshll.u32 (!%p166_p9), %s2159_s19, 8 }
  0x11   : > { %1786 = vmatprep.subr.bf16.mxu1 (!%p166_p9), %v2108_v1  ;;  %1788 = vmatprep.mubr.msk.bf16.mxu1 (!%p166_p9), %vm2109_vm0, %v2108_v1  ;;  %v2000_v14 = vld [vmem:[%s2493_s1 + $0x60] sm:$0xff] (!%p166_p9)   ;;  %v2001_v15 = vld [vmem:[%s2493_s1 + $0x70] sm:$0xff] (!%p166_p9)   ;;  %v2002_v16 = vld [vmem:[%s2493_s1 + $0x68] sm:$0xff] (!%p166_p9)   ;;  %s2449_s29 = scalar_lea.hbm (!%p166_p9), %s2496_s4, %s1715_s23  ;;  %s2451_s30 = scalar_lea.sflag (!%p166_p9), [#allocation3], %s188_s11 }
  0x12   : > { %v2003_v17 = vld [vmem:[%s2493_s1 + $0x78] sm:$0xff] (!%p166_p9)   ;;  %v2004_v18 = vld [vmem:[%s2493_s1 + $0x80] sm:$0xff] (!%p166_p9)   ;;  %v2005_v19 = vld [vmem:[%s2493_s1 + $0x90] sm:$0xff] (!%p166_p9)  }
  0x13   : > { %1779 = vmatpush3.bf16.msra.mxu0 (!%p166_p9), %v1989_v3  ;;  %v2006_v20 = vld [vmem:[%s2493_s1 + $0x88] sm:$0xff] (!%p166_p9)   ;;  %v2007_v21 = vld [vmem:[%s2493_s1 + $0x98] sm:$0xff] (!%p166_p9)   ;;  %v2008_v22 = vld [vmem:[%s2493_s1 + $0xa0] sm:$0xff] (!%p166_p9)  }
  0x14   : > { %1787 = vmatpush3.bf16.msra.mxu1 (!%p166_p9), %v1990_v4  ;;  %1792 = vmatprep.subr.bf16.mxu0 (!%p166_p9), %v2108_v1  ;;  %v2009_v23 = vld [vmem:[%s2493_s1 + $0xb0] sm:$0xff] (!%p166_p9)   ;;  %v2010_v24 = vld [vmem:[%s2493_s1 + $0xa8] sm:$0xff] (!%p166_p9)   ;;  %v2011_v25 = vld [vmem:[%s2493_s1 + $0xb8] sm:$0xff] (!%p166_p9)  }
  0x15   : > { %s192_s9 = scalar_select %p191_p10, %s2159_s19, 1  ;;  %1800 = vmatprep.subr.bf16.mxu1 %v2108_v1 }
  0x16   : > { %s2110_s19 = smov [#allocation2]  }
  0x17   : > { %s1714_s10 = sshll.u32 %s192_s9, 3  ;;  %s2048_s6 = sshll.u32 %s2110_s19, 4  ;;  %s2049_s6 = int_to_ptr.vmem [resolvable:$false] %s2048_s6 }
  0x18   : > { %s195_s20 = scalar_lea.vmem %s2492_s0, %s1714_s10  ;;  %s2050_s7 = scalar_lea.vmem %s2049_s6, 512 }
  0x19   : > { %v2218_v7 = vld [vmem:[%s195_s20] sm:$0xff]   ;;  %s190_s20 = scalar_lea.vmem [#allocation2], %s1656_s12 }
  0x1a   : > { %1781 = vmatmul.mubr.msk.bf16.vlgmr.msra.gmra.mrb[0].mxu0 %vm264_vm1, %v2218_v7  ;;  %1789 = vmatmul.mubr.msk.bf16.vlgmr.msra.gmra.mrb[0].mxu1 %vm264_vm1, %v2218_v7  ;;  %s1590_s22 = sshll.u32 %s190_s20, 4  ;;  %s2444_s22 = int_to_ptr.vmem [resolvable:$true] %s1590_s22 }
  0x1b   : > { %1793 = vmatpush3.bf16.msra.mxu0 %v1992_v5  ;;  %1801 = vmatpush3.bf16.msra.mxu1 %v1993_v6  ;;  %s2044_s5 = scalar_lea.vmem %s2444_s22, 256  ;;  %p2051_p0 = scmp.lt.s32.totalorder %s2444_s22, %s2049_s6 }
  0x1c   : > { %1794 = vmatprep.subr.bf16.mxu0 %v2108_v1  ;;  %1802 = vmatprep.subr.bf16.mxu1 %v2108_v1  ;;  %p2045_p11 = scmp.ne.s32.totalorder %s2444_s22, %s2044_s5  ;;  %p2052_p1 = scmp.lt.s32.totalorder %s2050_s7, %s2044_s5 }
  0x1d   : > { %1796 = vmatprep.mubr.msk.bf16.mxu0 %vm2109_vm0, %v2108_v1  ;;  %1804 = vmatprep.mubr.msk.bf16.mxu1 %vm2109_vm0, %v2108_v1 }
  0x1e   : > { %p2046_p12 = pnand %p2045_p11, %p2176_p5  ;;  %p2053_p2 = por %p2052_p1, %p2051_p0 }
  0x1f   : > { %1795 = vmatpush3.bf16.msra.mxu0 %v1994_v8  ;;  %1803 = vmatpush3.bf16.msra.mxu1 %v1995_v9 }
  0x20   : > { %1808 = vmatprep.subr.bf16.mxu0 %v2108_v1  ;;  %1816 = vmatprep.subr.bf16.mxu1 %v2108_v1  ;;  %p2047_p13 = pneg %p2046_p12 }
  0x22   : > { %1797 = vmatmul.mubr.msk.bf16.vlgmr.msra.gmra.mrb[4].mxu0 %vm264_vm1, %v2218_v7  ;;  %1805 = vmatmul.mubr.msk.bf16.vlgmr.msra.gmra.mrb[4].mxu1 %vm264_vm1, %v2218_v7  ;;  %p2054_p3 = pnand %p2053_p2, %p2047_p13 }
  0x23   : > { %1809 = vmatpush3.bf16.msra.mxu0 %v1996_v10  ;;  %1817 = vmatpush3.bf16.msra.mxu1 %v1997_v11 }
  0x24   : > { %1810 = vmatprep.subr.bf16.mxu0 %v2108_v1  ;;  %1818 = vmatprep.subr.bf16.mxu1 %v2108_v1 }
  0x25   : > { %1812 = vmatprep.mubr.msk.bf16.mxu0 %vm2109_vm0, %v2108_v1  ;;  %1820 = vmatprep.mubr.msk.bf16.mxu1 %vm2109_vm0, %v2108_v1 }
  0x27   : > { %1811 = vmatpush3.bf16.msra.mxu0 %v1998_v12  ;;  %1819 = vmatpush3.bf16.msra.mxu1 %v1999_v13 }
  0x28   : > { %1824 = vmatprep.subr.bf16.mxu0 %v2108_v1  ;;  %1832 = vmatprep.subr.bf16.mxu1 %v2108_v1 }
  0x2a   : > { %1813 = vmatmul.mubr.msk.bf16.vlgmr.msra.gmra.mrb[8].mxu0 %vm264_vm1, %v2218_v7  ;;  %1821 = vmatmul.mubr.msk.bf16.vlgmr.msra.gmra.mrb[8].mxu1 %vm264_vm1, %v2218_v7 }
  0x2b   : > { %1825 = vmatpush3.bf16.msra.mxu0 %v2000_v14  ;;  %1833 = vmatpush3.bf16.msra.mxu1 %v2001_v15 }
  0x2c   : > { %1826 = vmatprep.subr.bf16.mxu0 %v2108_v1  ;;  %1834 = vmatprep.subr.bf16.mxu1 %v2108_v1 }
  0x2d   : > { %1828 = vmatprep.mubr.msk.bf16.mxu0 %vm2109_vm0, %v2108_v1  ;;  %1836 = vmatprep.mubr.msk.bf16.mxu1 %vm2109_vm0, %v2108_v1 }
  0x2f   : > { %1827 = vmatpush3.bf16.msra.mxu0 %v2002_v16  ;;  %1835 = vmatpush3.bf16.msra.mxu1 %v2003_v17 }
  0x30   : > { %1840 = vmatprep.subr.bf16.mxu0 %v2108_v1  ;;  %1848 = vmatprep.subr.bf16.mxu1 %v2108_v1 }
  0x32   : > { %1829 = vmatmul.mubr.msk.bf16.vlgmr.msra.gmra.mrb[12].mxu0 %vm264_vm1, %v2218_v7  ;;  %1837 = vmatmul.mubr.msk.bf16.vlgmr.msra.gmra.mrb[12].mxu1 %vm264_vm1, %v2218_v7 }
  0x33   : > { %1841 = vmatpush3.bf16.msra.mxu0 %v2004_v18  ;;  %1844 = vmatprep.mubr.msk.bf16.mxu0 %vm2109_vm0, %v2108_v1 }
  0x34   : > { %1842 = vmatprep.subr.bf16.mxu0 %v2108_v1  ;;  %1852 = vmatprep.mubr.msk.bf16.mxu1 %vm2109_vm0, %v2108_v1 }
  0x35   : > { %1849 = vmatpush3.bf16.msra.mxu1 %v2005_v19 }
  0x36   : > { %1850 = vmatprep.subr.bf16.mxu1 %v2108_v1 }
  0x37   : > { %1843 = vmatpush3.bf16.msra.mxu0 %v2006_v20 }
  0x38   : > { %1856 = vmatprep.subr.bf16.mxu0 %v2108_v1 }
  0x39   : > { %1851 = vmatpush3.bf16.msra.mxu1 %v2007_v21 }
  0x3a   : > { %1845 = vmatmul.mubr.msk.bf16.vlgmr.msra.gmra.mrb[16].mxu0 %vm264_vm1, %v2218_v7  ;;  %1864 = vmatprep.subr.bf16.mxu1 %v2108_v1 }
  0x3b   : > { %1860 = vmatprep.mubr.msk.bf16.mxu0 %vm2109_vm0, %v2108_v1  ;;  %1857 = vmatpush3.bf16.msra.mxu0 %v2008_v22 }
  0x3c   : > { %1853 = vmatmul.mubr.msk.bf16.vlgmr.msra.gmra.mrb[16].mxu1 %vm264_vm1, %v2218_v7  ;;  %1858 = vmatprep.subr.bf16.mxu0 %v2108_v1 }
  0x3d   : > { %1865 = vmatpush3.bf16.msra.mxu1 %v2009_v23  ;;  %1868 = vmatprep.mubr.msk.bf16.mxu1 %vm2109_vm0, %v2108_v1 }
  0x3e   : > { %1866 = vmatprep.subr.bf16.mxu1 %v2108_v1 }
  0x3f   : > { %1859 = vmatpush3.bf16.msra.mxu0 %v2010_v24 }
  0x40   : > { %1872 = vmatprep.subr.bf16.mxu0 %v2108_v1 }
  0x41   : > { %1867 = vmatpush3.bf16.msra.mxu1 %v2011_v25 }
  0x42   : > { %1878 = vmatprep.subr.bf16.mxu1 %v2108_v1  ;;  %1861 = vmatmul.mubr.msk.bf16.vlgmr.msra.gmra.mrb[20].mxu0 %vm264_vm1, %v2218_v7 }
  0x43   : > { %1874 = vmatprep.mubr.msk.bf16.mxu0 %vm2109_vm0, %v2108_v1 }
  0x44   : > { %1869 = vmatmul.mubr.msk.bf16.vlgmr.msra.gmra.mrb[20].mxu1 %vm264_vm1, %v2218_v7 }
  0x45   : > { %1880 = vmatprep.mubr.msk.bf16.mxu1 %vm2109_vm0, %v2108_v1 }
  0xed   : > { %v302_v26 = vpop.f32.mrb[0].mxu0  ;;  %v355_v27 = vpop.f32.mrb[0].mxu1 }
  0xee   : > { %v1782_v28 = vpop.f32.mrb[1].mxu0  ;;  %v1790_v29 = vpop.f32.mrb[1].mxu1 }
  0xef   : > { %v305_v30 = vpop.f32.mrb[2].mxu0  ;;  %v358_v31 = vpop.f32.mrb[2].mxu1 }
  0xf0   : > { %v892_v32 = vpack.c.bf16 %v305_v30, %v302_v26  ;;  %v1783_v33 = vpop.f32.mrb[3].mxu0  ;;  %v893_v34 = vpack.c.bf16 %v358_v31, %v355_v27  ;;  %v1791_v35 = vpop.f32.mrb[3].mxu1 }
  0xf5   : > { %v408_v36 = vpop.f32.mrb[4].mxu0  ;;  %v461_v37 = vpop.f32.mrb[4].mxu1 }
  0xf6   : > { %v1798_v38 = vpop.f32.mrb[5].mxu0  ;;  %v1806_v39 = vpop.f32.mrb[5].mxu1 }
  0xf7   : > { %v411_v40 = vpop.f32.mrb[6].mxu0  ;;  %v464_v41 = vpop.f32.mrb[6].mxu1 }
  0xf8   : > { %v894_v42 = vpack.c.bf16 %v411_v40, %v408_v36  ;;  %v1799_v43 = vpop.f32.mrb[7].mxu0  ;;  %v895_v44 = vpack.c.bf16 %v464_v41, %v461_v37  ;;  %v1807_v45 = vpop.f32.mrb[7].mxu1 }
  0xfd   : > { %v514_v46 = vpop.f32.mrb[8].mxu0  ;;  %v567_v47 = vpop.f32.mrb[8].mxu1 }
  0xfe   : > { %v1814_v48 = vpop.f32.mrb[9].mxu0  ;;  %v1822_v49 = vpop.f32.mrb[9].mxu1 }
  0xff   : > { %v517_v50 = vpop.f32.mrb[10].mxu0  ;;  %v570_v51 = vpop.f32.mrb[10].mxu1 }
 0x100   : > { %v896_v52 = vpack.c.bf16 %v517_v50, %v514_v46  ;;  %v897_v53 = vpack.c.bf16 %v570_v51, %v567_v47  ;;  %v1815_v54 = vpop.f32.mrb[11].mxu0  ;;  %v1823_v55 = vpop.f32.mrb[11].mxu1 }
 0x102   : > { %v909_v56 = vsel %vm904_vm2, %v896_v52, 0  ;;  %v956_v57 = vsel %vm904_vm2, %v897_v53, 0 }
 0x103   : > { %1873 = vmatpush3.bf16.xpose.msra.mxu0 %v909_v56  ;;  %1879 = vmatpush3.bf16.xpose.msra.mxu1 %v956_v57 }
 0x104   : > { %1884 = vmatprep.subr.bf16.mxu0 %v2108_v1  ;;  %1890 = vmatprep.subr.bf16.mxu1 %v2108_v1 }
 0x105   : > { %v620_v58 = vpop.f32.mrb[12].mxu0  ;;  %v673_v59 = vpop.f32.mrb[12].mxu1 }
 0x106   : > { %v1830_v60 = vpop.f32.mrb[13].mxu0  ;;  %v1838_v61 = vpop.f32.mrb[13].mxu1 }
 0x107   : > { %v623_v62 = vpop.f32.mrb[14].mxu0  ;;  %v676_v63 = vpop.f32.mrb[14].mxu1 }
 0x108   : > { %v898_v0 = vpack.c.bf16 %v623_v62, %v620_v58  ;;  %v899_v2 = vpack.c.bf16 %v676_v63, %v673_v59  ;;  %v1831_v3 = vpop.f32.mrb[15].mxu0  ;;  %v1839_v4 = vpop.f32.mrb[15].mxu1 }
 0x10a   : > { %v1003_v5 = vsel %vm904_vm2, %v898_v0, 0  ;;  %v1050_v6 = vsel %vm904_vm2, %v899_v2, 0  ;;  %1875 = vmatmul.mubr.msk.bf16.vlgmr.msra.gmra.mrb[24].mxu0 %vm904_vm2, %v892_v32  ;;  %1881 = vmatmul.mubr.msk.bf16.vlgmr.msra.gmra.mrb[24].mxu1 %vm904_vm2, %v893_v34 }
 0x10b   : > { %1885 = vmatpush3.bf16.xpose.msra.mxu0 %v1003_v5  ;;  %1891 = vmatpush3.bf16.xpose.msra.mxu1 %v1050_v6 }
 0x10c   : > { %1886 = vmatprep.mubr.msk.bf16.mxu0 %vm2109_vm0, %v2108_v1  ;;  %1892 = vmatprep.mubr.msk.bf16.mxu1 %vm2109_vm0, %v2108_v1 }
 0x10d   : > { %1896 = vmatprep.subr.bf16.mxu0 %v2108_v1  ;;  %1902 = vmatprep.subr.bf16.mxu1 %v2108_v1  ;;  %v726_v7 = vpop.f32.mrb[16].mxu0 }
 0x10e   : > { %v1846_v8 = vpop.f32.mrb[17].mxu0 }
 0x10f   : > { %v729_v9 = vpop.f32.mrb[18].mxu0  ;;  %v779_v10 = vpop.f32.mrb[16].mxu1 }
 0x110   : > { %v900_v11 = vpack.c.bf16 %v729_v9, %v726_v7  ;;  %v1847_v12 = vpop.f32.mrb[19].mxu0  ;;  %v1854_v13 = vpop.f32.mrb[17].mxu1 }
 0x111   : > { %v782_v14 = vpop.f32.mrb[18].mxu1 }
 0x112   : > { %1887 = vmatmul.mubr.msk.bf16.vlgmr.msra.gmra.mrb[28].mxu0 %vm904_vm2, %v894_v42  ;;  %1893 = vmatmul.mubr.msk.bf16.vlgmr.msra.gmra.mrb[28].mxu1 %vm904_vm2, %v895_v44  ;;  %v901_v15 = vpack.c.bf16 %v782_v14, %v779_v10  ;;  %v1855_v16 = vpop.f32.mrb[19].mxu1 }
 0x113   : > { %1898 = vmatprep.mubr.msk.bf16.mxu0 %vm2109_vm0, %v2108_v1  ;;  %1904 = vmatprep.mubr.msk.bf16.mxu1 %vm2109_vm0, %v2108_v1 }
 0x114   : > { %1897 = vmatpush3.bf16.msra.mxu0 %v900_v11  ;;  %1903 = vmatpush3.bf16.msra.mxu1 %v901_v15 }
 0x115   : > { %1908 = vmatprep.subr.bf16.mxu0 %v2108_v1  ;;  %1914 = vmatprep.subr.bf16.mxu1 %v2108_v1  ;;  %v2365_v17 = vpop.f32.mrb[20].mxu0 }
 0x116   : > { %v1862_v19 = vpop.f32.mrb[21].mxu0 }
 0x117   : > { %v2367_v18 = vpop.f32.mrb[20].mxu1  ;;  %v2369_v21 = vpop.f32.mrb[22].mxu0 }
 0x118   : > { %v1870_v20 = vpop.f32.mrb[21].mxu1  ;;  %v902_v23 = vpack.c.bf16 %v2369_v21, %v2365_v17  ;;  %v1863_v24 = vpop.f32.mrb[23].mxu0 }
 0x119   : > { %v2371_v22 = vpop.f32.mrb[22].mxu1 }
 0x11a   : > { %v903_v25 = vpack.c.bf16 %v2371_v22, %v2367_v18  ;;  %v1871_v26 = vpop.f32.mrb[23].mxu1  ;;  %v1366_v18 = vld [vmem:[%s2494_s2] sm:$0xf] }
 0x11b   : > { %v1375_v22 = vsel %vm1373_vm4, %v1366_v18, 0 }
 0x1dd   : > { %v945_v27 = vpop.f32.mrb[24].mxu0  ;;  %v992_v28 = vpop.f32.mrb[24].mxu1 }
 0x1de   : > { %v1876_v29 = vpop.f32.mrb[25].mxu0  ;;  %v1882_v30 = vpop.f32.mrb[25].mxu1  ;;  %v1100_v31 = vsel %vm1093_vm3, %v992_v28, -inf  ;;  %v1094_v32 = vsel %vm1093_vm3, %v945_v27, -inf }
 0x1df   : > { %1101 = vmax.xlane.f32.xlu1 %v1100_v31  ;;  %v995_v33 = vpop.f32.mrb[26].mxu1  ;;  %1095 = vmax.xlane.f32.xlu0 %v1094_v32  ;;  %v948_v34 = vpop.f32.mrb[26].mxu0 }
 0x1e0   : > { %v1877_v35 = vpop.f32.mrb[27].mxu0  ;;  %v1883_v36 = vpop.f32.mrb[27].mxu1  ;;  %v1103_v37 = vsel %vm1093_vm3, %v995_v33, -inf  ;;  %v1097_v38 = vsel %vm1093_vm3, %v948_v34, -inf }
 0x1e3   : > { %1104 = vmax.xlane.f32.xlu1 %v1103_v37  ;;  %1098 = vmax.xlane.f32.xlu0 %v1097_v38 }
 0x1e5   : > { %v1039_v39 = vpop.f32.mrb[28].mxu0  ;;  %v1086_v40 = vpop.f32.mrb[28].mxu1 }
 0x1e6   : > { %v1888_v41 = vpop.f32.mrb[29].mxu0  ;;  %v1894_v42 = vpop.f32.mrb[29].mxu1  ;;  %v1106_v43 = vsel %vm1093_vm3, %v1039_v39, -inf  ;;  %v1112_v49 = vsel %vm1093_vm3, %v1086_v40, -inf }
 0x1e7   : > { %v1089_v44 = vpop.f32.mrb[30].mxu1  ;;  %1107 = vmax.xlane.f32.xlu0 %v1106_v43  ;;  %v1042_v45 = vpop.f32.mrb[30].mxu0 }
 0x1e8   : > { %v1889_v46 = vpop.f32.mrb[31].mxu0  ;;  %v1895_v47 = vpop.f32.mrb[31].mxu1  ;;  %v1109_v48 = vsel %vm1093_vm3, %v1042_v45, -inf  ;;  %v1115_v50 = vsel %vm1093_vm3, %v1089_v44, -inf }
 0x1e9   : > { %1110 = vmax.xlane.f32.xlu1 %v1109_v48 }
 0x1eb   : > { %1113 = vmax.xlane.f32.xlu0 %v1112_v49 }
 0x1ed   : > { %1116 = vmax.xlane.f32.xlu1 %v1115_v50 }
 0x26c   : > { %v1102_v51 = vpop.xlane.xlu1 %1101  ;;  %v1096_v52 = vpop.xlane.xlu0 %1095 }
 0x26d   : > { %v1120_v53 = vsub.f32 %v992_v28, %v1102_v51  ;;  %v1118_v54 = vsub.f32 %v945_v27, %v1096_v52 }
 0x26f   : > { %v1126_v55 = vmul.f32 1.442695, %v1118_v54  ;;  %v1130_v56 = vmul.f32 1.442695, %v1120_v53 }
 0x270   : > { %v1105_v57 = vpop.xlane.xlu1 %1104  ;;  %v1099_v58 = vpop.xlane.xlu0 %1098 }
 0x271   : > { %v1121_v59 = vsub.f32 %v995_v33, %v1105_v57  ;;  %v1119_v60 = vsub.f32 %v948_v34, %v1099_v58  ;;  %2012 = vpow2.f32 %v1126_v55 }
 0x272   : > { %2014 = vpow2.f32 %v1130_v56 }
 0x273   : > { %v1128_v61 = vmul.f32 1.442695, %v1119_v60  ;;  %v1132_v62 = vmul.f32 1.442695, %v1121_v59 }
 0x274   : > { %v1108_v63 = vpop.xlane.xlu0 %1107 }
 0x275   : > { %v1122_v0 = vsub.f32 %v1039_v39, %v1108_v63  ;;  %2016 = vpow2.f32 %v1128_v61  ;;  %v1368_v61 = vld [vmem:[%s2494_s2 + $0x8] sm:$0xf] }
 0x276   : > { %v1111_v2 = vpop.xlane.xlu1 %1110  ;;  %2018 = vpow2.f32 %v1132_v62 }
 0x277   : > { %v1134_v3 = vmul.f32 1.442695, %v1122_v0  ;;  %v1123_v4 = vsub.f32 %v1042_v45, %v1111_v2 }
 0x278   : > { %v1114_v5 = vpop.xlane.xlu0 %1113 }
 0x279   : > { %2020 = vpow2.f32 %v1134_v3  ;;  %v1136_v6 = vmul.f32 1.442695, %v1123_v4  ;;  %v1124_v7 = vsub.f32 %v1086_v40, %v1114_v5  ;;  %v1469_v3 = vsel %vm1373_vm4, %v1368_v61, 0  ;;  %v1369_v5 = vld [vmem:[%s2494_s2 + $0xc] sm:$0xf] }
 0x27a   : > { %v1117_v8 = vpop.xlane.xlu1 %1116 }
 0x27b   : > { %v1138_v9 = vmul.f32 1.442695, %v1124_v7  ;;  %v1125_v10 = vsub.f32 %v1089_v44, %v1117_v8  ;;  %v2013_v11 = vpop.eup %2012  ;;  %2022 = vpow2.f32 %v1136_v6 }
 0x27c   : > { %v1142_v13 = vsel %vm1093_vm3, %v2013_v11, 0.0  ;;  %v2015_v14 = vpop.eup %2014 }
 0x27d   : > { %2024 = vpow2.f32 %v1138_v9  ;;  %v1140_v12 = vmul.f32 1.442695, %v1125_v10  ;;  %1143 = vadd.xlane.f32.xlu0 %v1142_v13  ;;  %v1148_v16 = vsel %vm1093_vm3, %v2015_v14, 0.0  ;;  %v1516_v10 = vsel %vm1373_vm4, %v1369_v5, 0 }
 0x27f   : > { %v2017_v15 = vpop.eup %2016  ;;  %2026 = vpow2.f32 %v1140_v12 }
 0x280   : > { %v1145_v19 = vsel %vm1093_vm3, %v2017_v15, 0.0  ;;  %v2019_v20 = vpop.eup %2018 }
 0x281   : > { %1149 = vadd.xlane.f32.xlu0 %v1148_v16  ;;  %1146 = vadd.xlane.f32.xlu1 %v1145_v19  ;;  %v1151_v27 = vsel %vm1093_vm3, %v2019_v20, 0.0 }
 0x283   : > { %v2021_v24 = vpop.eup %2020 }
 0x284   : > { %v1154_v26 = vsel %vm1093_vm3, %v2021_v24, 0.0 }
 0x285   : > { %v2023_v28 = vpop.eup %2022  ;;  %1155 = vadd.xlane.f32.xlu0 %v1154_v26  ;;  %1152 = vadd.xlane.f32.xlu1 %v1151_v27 }
 0x286   : > { %v1157_v31 = vsel %vm1093_vm3, %v2023_v28, 0.0 }
 0x287   : > { %v2025_v29 = vpop.eup %2024 }
 0x288   : > { %v1160_v30 = vsel %vm1093_vm3, %v2025_v29, 0.0 }
 0x289   : > { %v2027_v32 = vpop.eup %2026  ;;  %1161 = vadd.xlane.f32.xlu0 %v1160_v30  ;;  %1158 = vadd.xlane.f32.xlu1 %v1157_v31 }
 0x28a   : > { %v1163_v33 = vsel %vm1093_vm3, %v2027_v32, 0.0 }
 0x28d   : > { %1164 = vadd.xlane.f32.xlu1 %v1163_v33 }
 0x30a   : > { %v1144_v34 = vpop.xlane.xlu0 %1143 }
 0x30b   : > { %2028 = vrcp.f32 %v1144_v34 }
 0x30e   : > { %v1150_v35 = vpop.xlane.xlu0 %1149  ;;  %v1147_v36 = vpop.xlane.xlu1 %1146 }
 0x30f   : > { %2030 = vrcp.f32 %v1147_v36 }
 0x310   : > { %2032 = vrcp.f32 %v1150_v35 }
 0x312   : > { %v1156_v37 = vpop.xlane.xlu0 %1155  ;;  %v1153_v38 = vpop.xlane.xlu1 %1152 }
 0x313   : > { %2034 = vrcp.f32 %v1153_v38 }
 0x314   : > { %2036 = vrcp.f32 %v1156_v37 }
 0x315   : > { %v2029_v41 = vpop.eup %2028 }
 0x316   : > { %v1162_v39 = vpop.xlane.xlu0 %1161  ;;  %v1159_v40 = vpop.xlane.xlu1 %1158  ;;  %v1174_v44 = vmul.f32 %v2029_v41, %v2013_v11 }
 0x317   : > { %2038 = vrcp.f32 %v1159_v40 }
 0x318   : > { %2040 = vrcp.f32 %v1162_v39 }
 0x319   : > { %v2031_v42 = vpop.eup %2030 }
 0x31a   : > { %v1165_v43 = vpop.xlane.xlu1 %1164  ;;  %v1175_v45 = vmul.f32 %v2031_v42, %v2017_v15  ;;  %v2033_v46 = vpop.eup %2032 }
 0x31b   : > { %2042 = vrcp.f32 %v1165_v43  ;;  %v1176_v49 = vmul.f32 %v2033_v46, %v2015_v14  ;;  %v1708_v43 = vld [vmem:[%s2495_s3] ss:$0 sm:$0xff] }
 0x31c   : > { %v1182_v47 = vpack.c.bf16 %v1175_v45, %v1174_v44 }
 0x31d   : > { %v2035_v48 = vpop.eup %2034 }
 0x31e   : > { %v1177_v50 = vmul.f32 %v2035_v48, %v2019_v20  ;;  %1899 = vmatmul.mubr.msk.bf16.vlgmr.msra.gmra.mrb[32].mxu0 %vm1093_vm3, %v1182_v47  ;;  %v2037_v51 = vpop.eup %2036 }
 0x31f   : > { %1909 = vmatpush3.bf16.msra.mxu0 %v902_v23  ;;  %1910 = vmatprep.mubr.msk.bf16.mxu0 %vm2109_vm0, %v2108_v1  ;;  %v1178_v55 = vmul.f32 %v2037_v51, %v2021_v24 }
 0x320   : > { %v1183_v52 = vpack.c.bf16 %v1177_v50, %v1176_v49  ;;  %1920 = vmatprep.subr.bf16.mxu0 %v2108_v1 }
 0x321   : > { %v2039_v53 = vpop.eup %2038 }
 0x322   : > { %v2041_v54 = vpop.eup %2040  ;;  %v1179_v56 = vmul.f32 %v2039_v53, %v2023_v28  ;;  %1905 = vmatmul.mubr.msk.bf16.vlgmr.msra.gmra.mrb[32].mxu1 %vm1093_vm3, %v1183_v52 }
 0x323   : > { %1915 = vmatpush3.bf16.msra.mxu1 %v903_v25  ;;  %1916 = vmatprep.mubr.msk.bf16.mxu1 %vm2109_vm0, %v2108_v1  ;;  %v1180_v23 = vmul.f32 %v2041_v54, %v2025_v29  ;;  %v1367_v25 = vld [vmem:[%s2494_s2 + $0x4] sm:$0xf] }
 0x324   : > { %v1184_v21 = vpack.c.bf16 %v1179_v56, %v1178_v55  ;;  %1926 = vmatprep.subr.bf16.mxu1 %v2108_v1  ;;  %v1422_v59 = vsel %vm1373_vm4, %v1367_v25, 0 }
 0x325   : > { %v2043_v17 = vpop.eup %2042 }
 0x326   : > { %v1181_v57 = vmul.f32 %v2043_v17, %v2027_v32  ;;  %1911 = vmatmul.mubr.msk.bf16.vlgmr.msra.gmra.mrb[36].mxu0 %vm1093_vm3, %v1184_v21 }
 0x327   : > { %1922 = vmatprep.mubr.msk.bf16.mxu0 %vm2109_vm0, %v2108_v1  ;;  %1921 = vmatpush3.bf16.msra.mxu0 %v1375_v22 }
 0x328   : > { %v1185_v58 = vpack.c.bf16 %v1181_v57, %v1180_v23  ;;  %1932 = vmatprep.subr.bf16.mxu0 %v2108_v1 }
 0x32a   : > { %1917 = vmatmul.mubr.msk.bf16.vlgmr.msra.gmra.mrb[36].mxu1 %vm1093_vm3, %v1185_v58 }
 0x32b   : > { %1928 = vmatprep.mubr.msk.bf16.mxu1 %vm2109_vm0, %v2108_v1  ;;  %1927 = vmatpush3.bf16.msra.mxu1 %v1422_v59 }
 0x32c   : > { %1938 = vmatprep.subr.bf16.mxu1 %v2108_v1 }
 0x3f1   : > { %v1223_v60 = vpop.f32.mrb[32].mxu0 }
 0x3f2   : > { %v1900_v62 = vpop.f32.mrb[33].mxu0 }
 0x3f3   : > { %v1226_v63 = vpop.f32.mrb[34].mxu0 }
 0x3f4   : > { %v1362_v0 = vpack.c.bf16 %v1226_v63, %v1223_v60  ;;  %v1901_v2 = vpop.f32.mrb[35].mxu0 }
 0x3f5   : > { %v1267_v4 = vpop.f32.mrb[32].mxu1 }
 0x3f6   : > { %v1906_v6 = vpop.f32.mrb[33].mxu1  ;;  %1923 = vmatmul.mubr.msk.bf16.vlgmr.msra.gmra.mrb[40].mxu0 %vm904_vm2, %v1362_v0 }
 0x3f7   : > { %v1270_v7 = vpop.f32.mrb[34].mxu1  ;;  %1933 = vmatpush3.bf16.msra.mxu0 %v1469_v3  ;;  %1934 = vmatprep.mubr.msk.bf16.mxu0 %vm2109_vm0, %v2108_v1 }
 0x3f8   : > { %v1363_v8 = vpack.c.bf16 %v1270_v7, %v1267_v4  ;;  %v1907_v9 = vpop.f32.mrb[35].mxu1 }
 0x3f9   : > { %v1311_v11 = vpop.f32.mrb[36].mxu0 }
 0x3fa   : > { %v1912_v12 = vpop.f32.mrb[37].mxu0  ;;  %1929 = vmatmul.mubr.msk.bf16.vlgmr.msra.gmra.mrb[40].mxu1 %vm904_vm2, %v1363_v8 }
 0x3fb   : > { %v1314_v13 = vpop.f32.mrb[38].mxu0  ;;  %1939 = vmatpush3.bf16.msra.mxu1 %v1516_v10  ;;  %1940 = vmatprep.mubr.msk.bf16.mxu1 %vm2109_vm0, %v2108_v1 }
 0x3fc   : > { %v1364_v14 = vpack.c.bf16 %v1314_v13, %v1311_v11  ;;  %v1913_v15 = vpop.f32.mrb[39].mxu0 }
 0x3fd   : > { %v1355_v16 = vpop.f32.mrb[36].mxu1 }
 0x3fe   : > { %v1918_v19 = vpop.f32.mrb[37].mxu1  ;;  %1935 = vmatmul.mubr.msk.bf16.vlgmr.msra.gmra.mrb[44].mxu0 %vm904_vm2, %v1364_v14 }
 0x3ff   : > { %v1358_v20 = vpop.f32.mrb[38].mxu1 }
 0x400   : > { %v1365_v24 = vpack.c.bf16 %v1358_v20, %v1355_v16  ;;  %v1919_v26 = vpop.f32.mrb[39].mxu1 }
 0x402   : > { %1941 = vmatmul.mubr.msk.bf16.vlgmr.msra.gmra.mrb[44].mxu1 %vm904_vm2, %v1365_v24 }
 0x4c9   : > { %v1411_v27 = vpop.f32.mrb[40].mxu0 }
 0x4ca   : > { %v1924_v28 = vpop.f32.mrb[41].mxu0 }
 0x4cb   : > { %v1414_v29 = vpop.f32.mrb[42].mxu0 }
 0x4cc   : > { %v1925_v30 = vpop.f32.mrb[43].mxu0 }
 0x4cd   : > { %v1458_v31 = vpop.f32.mrb[40].mxu1 }
 0x4ce   : > { %v1559_v32 = vadd.f32 %v1458_v31, %v1411_v27  ;;  %v1930_v33 = vpop.f32.mrb[41].mxu1 }
 0x4cf   : > { %v1461_v1 = vpop.f32.mrb[42].mxu1 }
 0x4d0   : > { %v1562_v34 = vadd.f32 %v1461_v1, %v1414_v29  ;;  %v1931_v35 = vpop.f32.mrb[43].mxu1 }
 0x4d1   : > { %v1505_v36 = vpop.f32.mrb[44].mxu0 }
 0x4d2   : > { %v1560_v37 = vadd.f32 %v1559_v32, %v1505_v36  ;;  %v1936_v38 = vpop.f32.mrb[45].mxu0 }
 0x4d3   : > { %v1508_v39 = vpop.f32.mrb[46].mxu0 }
 0x4d4   : > { %v1563_v40 = vadd.f32 %v1562_v34, %v1508_v39  ;;  %v1937_v41 = vpop.f32.mrb[47].mxu0 }
 0x4d5   : > { %v1552_v42 = vpop.f32.mrb[44].mxu1 }
 0x4d6   : > { %v1561_v44 = vadd.f32 %v1560_v37, %v1552_v42  ;;  %v1942_v45 = vpop.f32.mrb[45].mxu1 }
 0x4d7   : > { %v1555_v46 = vpop.f32.mrb[46].mxu1 }
 0x4d8   : > { %v1572_v47 = vadd.f32 %v1708_v43, %v1561_v44  ;;  %v1564_v48 = vadd.f32 %v1563_v40, %v1555_v46  ;;  %v1943_v49 = vpop.f32.mrb[47].mxu1 }
 0x4da   : > { %1574 = vst [vmem:[%s190_s20] sm:$0xff] %v1572_v47  ;;  %v1573_v50 = vadd.f32 %v1708_v43, %v1564_v48 }
 0x4dc   : > { %1575 = vst [vmem:[%s190_s20 + $0x8] sm:$0xff] %v1573_v50 }
 0x4dd   : > { %2057 = shalt.err (!%p2054_p3)
}
 0x4de   : > { %s2058_s8 = scalar_lea.hbm %s2449_s29, 256  ;;  %s2062_s11 = scalar_lea.hbm %s2496_s4, 512 }
 0x4df   : > { %p2059_p4 = scmp.ne.s32.totalorder %s2449_s29, %s2058_s8  ;;  %p2063_p9 = scmp.lt.u32.totalorder %s2449_s29, %s2496_s4 }
 0x4e0   : > { %p2064_p10 = scmp.lt.u32.totalorder %s2062_s11, %s2058_s8  ;;  %p2066_p12 = scmp.lt.u32.totalorder %s2058_s8, %s2449_s29 }
 0x4e1   : > { %p2060_p7 = pnand %p2059_p4, %p2176_p5 }
 0x4e2   : > { %p2065_p11 = por %p2064_p10, %p2063_p9 }
 0x4e3   : > { %p2061_p8 = pneg %p2060_p7 }
 0x4e4   : > { %p2067_p13 = por %p2066_p12, %p2065_p11 }
 0x4e6   : > { %p2068_p0 = pnand %p2067_p13, %p2061_p8 }
 0x4e8   : > { %2071 = shalt.err (!%p2068_p0)
}
 0x4e9   : > { %s2111_s14 = smov 128   ;;  %s2112_s20 = smov 8  }
 0x4ea   : > { %1944 = dma.vmem_to_hbm [thread:$0]  (%p2176_p5), %s2444_s22, 256, %s2449_s29, %s2451_s30, %s2111_s14, %s2111_s14, %s2112_s20  }
 0x4eb PF: > { %p1950_p1 = scmp.ge.s32.totalorder %s2106_s18, 2  ;;  %s1605_s23 = sand.u32 1, %s2094_s15  }
 0x4ec   : > { %s1606_s27 = scalar_lea.sflag [#allocation3], %s1605_s23 }
 0x4ed   : > { %p1947_p2 = pnand %p1950_p1, %p2180_p6 }
 0x4ef   : > { %2089 = dma.done.wait (!%p1947_p2), %s1606_s27, 256  }
 0x4f0   : > { %2091 = vsyncadd (!%p1947_p2), %s1606_s27, 4294967040  ;;  %p14_p3 = scmp.ge.s32.totalorder %s2163_s21, 4   ;;  %s2499_s15 = smov %s2098_s16 }
 0x4f1   : > { %s2500_s16 = smov %s2102_s17  ;;  %s2501_s17 = smov %s2174_s24 }
 0x4f2   : > { %s2502_s18 = smov %s2163_s21  ;;  %16 = sbr.rel (!%p14_p3) target bundleno = 3 (0x3), region = 71 }
 0x4f9   :  { %1611 = vsyncpa [#allocation3], 1 }
 0x4fa   :  { %1613 = vsyncpa [#allocation3 + $0x1], 1 }

</bundles_post_ra>
